<compile_context>
chip_gen: v7x
topology: tpu7x:2x2x1
jax: 0.10.0
libtpu: 0.0.40
codegen_flags: <defaults>
</compile_context>

<pallas_src>
import jax
import jax.numpy as jnp
from jax.experimental import pallas as pl
from jax.experimental.pallas import tpu as pltpu


_TINY_TRAFFIC_BYTES = 2 << 20   # below this, one full-array step is best
_BYTES_PER_ELEM = 4             # f32 end-to-end
_N_TENSOR_ARRAYS = 4            # x1, x2, x3 inputs + 1 output stream
_BUFFER_COUNT = 2               # default double-buffering (keep it)


def graph_kernel(w_ref, x1_ref, x2_ref, x3_ref, o_ref):
    # ---- scalar-only algebra (scalar unit, once per grid step) ----
    w0 = w_ref[0]
    w1 = w_ref[1]
    s1 = w0 * w0 + w1 * w1       # w0^2 + w1^2
    w0_over_w1 = w0 / w1
    three_w0 = 3.0 * w0

    # ---- vector path (hidden under the HBM DMA; kernel is mem-bound) ----
    x1 = x1_ref[...]
    x2 = x2_ref[...]
    x3 = x3_ref[...]

    r1 = x3 * s1
    # Keep the reference's two-term form exactly (avoids the cancellation-
    # prone single-polynomial refactor near the root of r1 + r2).
    r2 = (x3 + w0_over_w1) * (three_w0 + x3 * w1)
    d = w1 - x2
    r3 = x3 - (d * d) / w0

    # Exact divide kept: approx reciprocal would risk the 1e-5 budget for
    # zero wall-clock gain (divide hides under the DMA critical path).
    o_ref[...] = (r1 + r2) + r3 / (x1 - x2 - r1)


def _vmem_limit_bytes():
    """~70% of physical VMEM; safe (v7x-sized) fallback if the query fails."""
    cap = 64 << 20
    try:
        info = pltpu.get_tpu_info()
        cap = getattr(info, "vmem_capacity_bytes", cap)
    except Exception:
        pass
    return int(cap * 0.7)


def _round_up(x, m):
    return ((x + m - 1) // m) * m


def _choose_tiles(M, N, tile_budget_bytes):
    """Pick (tile_rows, tile_cols) for a 2-D cdiv grid.

    * tiny problems collapse to one full-array step,
    * otherwise force >= 2 grid steps so both v7x TensorCores engage,
    * lane tile is a multiple of 128 (or the full N), row tile a multiple of 8
      (or the full M), and the double-buffered footprint of the four f32
      streams stays within the budget.
    """
    total_bytes = _N_TENSOR_ARRAYS * M * N * _BYTES_PER_ELEM
    if total_bytes <= _TINY_TRAFFIC_BYTES:
        return M, N  # single step; full-array blocks are always layout-legal

    per_elem = _N_TENSOR_ARRAYS * _BUFFER_COUNT * _BYTES_PER_ELEM  # 32 B/elem

    # Lane tile: full width unless the input is extremely wide, in which case
    # tile the lane axis too (multiple of 128; ragged tail handled by cdiv).
    tile_cols = 8192 if N > 16384 else N

    # Row tile: largest multiple of 8 whose double-buffered footprint fits.
    tile_rows = tile_budget_bytes // (per_elem * tile_cols)
    tile_rows = max(8, (tile_rows // 8) * 8)

    if tile_rows >= M:
        tile_rows = M
        if tile_cols >= N:
            # Not tiny, but fits in one step: force >= 2 balanced row steps so
            # the grid can be sharded across v7x's two TensorCores.
            tile_rows = min(_round_up(pl.cdiv(M, 2), 8), M)
    return tile_rows, tile_cols


def graph_forward(w, x1, x2, x3):
    M, N = x1.shape
    assert x2.shape == (M, N) and x3.shape == (M, N)

    vmem_limit = _vmem_limit_bytes()
    # Headroom for the compiler's internal scratch / pipeline bookkeeping.
    tile_budget = max(4 << 20, vmem_limit - (4 << 20))
    tile_rows, tile_cols = _choose_tiles(M, N, tile_budget)
    grid = (pl.cdiv(M, tile_rows), pl.cdiv(N, tile_cols))

    tensor_spec = pl.BlockSpec((tile_rows, tile_cols), lambda i, j: (i, j))
    return pl.pallas_call(
        graph_kernel,
        out_shape=jax.ShapeDtypeStruct((M, N), jnp.float32),
        grid_spec=pltpu.PrefetchScalarGridSpec(
            num_scalar_prefetch=0,
            grid=grid,
            in_specs=[
                pl.BlockSpec(memory_space=pltpu.MemorySpace.SMEM),  # w: (2,)
                tensor_spec,   # x1
                tensor_spec,   # x2
                tensor_spec,   # x3
            ],
            out_specs=tensor_spec,
        ),
        compiler_params=pltpu.CompilerParams(
            dimension_semantics=("parallel", "parallel"),
            vmem_limit_bytes=vmem_limit,
        ),
    )(w, x1, x2, x3)


def graph_forward_ref(w, x1, x2, x3):
    # pure-JAX reference, mirrors the PyTorch forward exactly
    w0, w1 = w[0], w[1]
    r1 = x3 * (w0 ** 2 + w1 ** 2)
    r2 = (x3 + w0 / w1) * (3.0 * w0 + x3 * w1)
    r3 = x3 - (w1 - x2) ** 2 / w0
    return r1 + r2 + r3 / (x1 - x2 - r1)


if __name__ == "__main__":
    # deterministic parameter init, matching nn.Parameter([0.95, 0.288])
    w = jnp.array([0.95, 0.288], dtype=jnp.float32)

    # Small demo shape (single full-array step path).
    key = jax.random.PRNGKey(0)
    k1, k2, k3 = jax.random.split(key, 3)
    M, N = 16, 128
    x1 = jax.random.normal(k1, (M, N), dtype=jnp.float32) + 4.0  # keep denom away from 0
    x2 = jax.random.normal(k2, (M, N), dtype=jnp.float32)
    x3 = jax.random.normal(k3, (M, N), dtype=jnp.float32)

    out = jax.block_until_ready(graph_forward(w, x1, x2, x3))
    ref = graph_forward_ref(w, x1, x2, x3)
    assert out.shape == ref.shape and out.dtype == ref.dtype
    assert jnp.allclose(out, ref, rtol=1e-5, atol=1e-5)

    # Also exercise the multi-step cdiv path with a ragged row count
    # (forced >= 2 grid steps, final block only partially valid).
    M2, N2 = 300, 512
    k4, k5, k6 = jax.random.split(jax.random.PRNGKey(1), 3)
    y1 = jax.random.normal(k4, (M2, N2), dtype=jnp.float32) + 4.0
    y2 = jax.random.normal(k5, (M2, N2), dtype=jnp.float32)
    y3 = jax.random.normal(k6, (M2, N2), dtype=jnp.float32)
    out2 = jax.block_until_ready(graph_forward(w, y1, y2, y3))
    ref2 = graph_forward_ref(w, y1, y2, y3)
    assert jnp.allclose(out2, ref2, rtol=1e-5, atol=1e-5)

    print("KERNEL_OK")
</pallas_src>

<mosaic_0001>
module attributes {stable_mosaic.version = 11 : i64} {
  func.func @graph_kernel(%arg0: i32, %arg1: i32, %arg2: memref<2xf32, #tpu.memory_space<smem>>, %arg3: memref<16x128xf32, #tpu.memory_space<vmem>>, %arg4: memref<16x128xf32, #tpu.memory_space<vmem>>, %arg5: memref<16x128xf32, #tpu.memory_space<vmem>>, %arg6: memref<16x128xf32, #tpu.memory_space<vmem>>) attributes {dimension_semantics = [#tpu.dimension_semantics<parallel>, #tpu.dimension_semantics<parallel>], iteration_bounds = array<i64: 1, 1>, scalar_prefetch = 0 : i64, scratch_operands = 0 : i64, tpu.core_type = #tpu.core_type<tc>, window_params = [{transform_indices = @transform_0, window_bounds = array<i64: 2>}, {transform_indices = @transform_1, window_bounds = array<i64: 16, 128>}, {transform_indices = @transform_2, window_bounds = array<i64: 16, 128>}, {transform_indices = @transform_3, window_bounds = array<i64: 16, 128>}, {transform_indices = @transform_4, window_bounds = array<i64: 16, 128>}]} {
    %c0 = arith.constant 0 : index
    %0 = memref.load %arg2[%c0] : memref<2xf32, #tpu.memory_space<smem>>
    %c1 = arith.constant 1 : index
    %1 = memref.load %arg2[%c1] : memref<2xf32, #tpu.memory_space<smem>>
    %2 = arith.mulf %0, %0 : f32
    %3 = arith.mulf %1, %1 : f32
    %4 = arith.addf %2, %3 : f32
    %5 = arith.divf %0, %1 : f32
    %cst = arith.constant 3.000000e+00 : f32
    %6 = arith.mulf %cst, %0 : f32
    %c0_0 = arith.constant 0 : index
    %c0_1 = arith.constant 0 : index
    %7 = vector.load %arg3[%c0_0, %c0_1] : memref<16x128xf32, #tpu.memory_space<vmem>>, vector<16x128xf32>
    %c0_2 = arith.constant 0 : index
    %c0_3 = arith.constant 0 : index
    %8 = vector.load %arg4[%c0_2, %c0_3] : memref<16x128xf32, #tpu.memory_space<vmem>>, vector<16x128xf32>
    %c0_4 = arith.constant 0 : index
    %c0_5 = arith.constant 0 : index
    %9 = vector.load %arg5[%c0_4, %c0_5] : memref<16x128xf32, #tpu.memory_space<vmem>>, vector<16x128xf32>
    %10 = vector.broadcast %4 : f32 to vector<16x128xf32>
    %11 = arith.mulf %9, %10 : vector<16x128xf32>
    %12 = vector.broadcast %5 : f32 to vector<16x128xf32>
    %13 = arith.addf %9, %12 : vector<16x128xf32>
    %14 = vector.broadcast %1 : f32 to vector<16x128xf32>
    %15 = arith.mulf %9, %14 : vector<16x128xf32>
    %16 = vector.broadcast %6 : f32 to vector<16x128xf32>
    %17 = arith.addf %16, %15 : vector<16x128xf32>
    %18 = arith.mulf %13, %17 : vector<16x128xf32>
    %19 = vector.broadcast %1 : f32 to vector<16x128xf32>
    %20 = arith.subf %19, %8 : vector<16x128xf32>
    %21 = arith.mulf %20, %20 : vector<16x128xf32>
    %22 = vector.broadcast %0 : f32 to vector<16x128xf32>
    %23 = arith.divf %21, %22 : vector<16x128xf32>
    %24 = arith.subf %9, %23 : vector<16x128xf32>
    %25 = arith.addf %11, %18 : vector<16x128xf32>
    %26 = arith.subf %7, %8 : vector<16x128xf32>
    %27 = arith.subf %26, %11 : vector<16x128xf32>
    %28 = arith.divf %24, %27 : vector<16x128xf32>
    %29 = arith.addf %25, %28 : vector<16x128xf32>
    %c0_6 = arith.constant 0 : index
    %c0_7 = arith.constant 0 : index
    %30 = vector.load %arg6[%c0_6, %c0_7] : memref<16x128xf32, #tpu.memory_space<vmem>>, vector<16x128xf32>
    tpu.vector_store %arg6[%c0_6, %c0_7], %29 {strides = array<i32>} : memref<16x128xf32, #tpu.memory_space<vmem>>, vector<16x128xf32>,
    return
  }
  func.func @transform_0(%arg0: i32, %arg1: i32) -> i32 {
    %c0_i32 = arith.constant 0 : i32
    %c0_i32_0 = arith.constant 0 : i32
    return %c0_i32 : i32
  }
  func.func @transform_1(%arg0: i32, %arg1: i32) -> (i32, i32) {
    %c0_i32 = arith.constant 0 : i32
    return %arg0, %arg1 : i32, i32
  }
  func.func @transform_2(%arg0: i32, %arg1: i32) -> (i32, i32) {
    %c0_i32 = arith.constant 0 : i32
    return %arg0, %arg1 : i32, i32
  }
  func.func @transform_3(%arg0: i32, %arg1: i32) -> (i32, i32) {
    %c0_i32 = arith.constant 0 : i32
    return %arg0, %arg1 : i32, i32
  }
  func.func @transform_4(%arg0: i32, %arg1: i32) -> (i32, i32) {
    %c0_i32 = arith.constant 0 : i32
    return %arg0, %arg1 : i32, i32
  }
}

</mosaic_0001>

<bundles_post_ra>
// kernel: tpu_custom_call.1
= control target key start
LH: loop header
LB: loop body
LE: loop exit
PB: predicated region body
PF: predicated region fallthrough
CT: control target
= control target key end

     0   :  { %9 = vsyncpa [#allocation5], 0  ;;  %s378_s0 = inlined_call_operand.hbm [shape: f32[2], index: 0, kind: input, shape index: {}]   ;;  %s379_s1 = inlined_call_operand.hbm [shape: f32[16,128], index: 1, kind: input, shape index: {}]   ;;  %s380_s2 = inlined_call_operand.hbm [shape: f32[16,128], index: 2, kind: input, shape index: {}]   ;;  %s381_s3 = inlined_call_operand.hbm [shape: f32[16,128], index: 3, kind: input, shape index: {}]   ;;  %s382_s4 = inlined_call_operand.hbm [shape: f32[16,128], index: 4, kind: output, shape index: {}]  }
   0x1   :  { %10 = vsyncpa [#allocation3], 0 }
   0x2   :  { %11 = vsyncpa [#allocation8], 0 }
   0x3   :  { %12 = vsyncpa [#allocation4], 0  ;;  %s267_s15 = smov [#allocation7]   ;;  %s268_s17 = smov [#allocation6]  }
   0x4   :  { %s38_s16 = sshll.u32 %s267_s15, 4  ;;  %s26_s18 = sshll.u32 %s268_s17, 4  ;;  %s39_s16 = int_to_ptr.vmem [resolvable:$true] %s38_s16  ;;  %s27_s18 = int_to_ptr.vmem [resolvable:$true] %s26_s18 }
   0x5   :  { %s161_s21 = scalar_lea.hbm %s380_s2, 256 }
   0x6   :  { %p162_p0 = scmp.ne.s32.totalorder %s380_s2, %s161_s21  ;;  %p165_p1 = scmp.lt.u32.totalorder %s161_s21, %s380_s2 }
   0x8   :  { %p167_p2 = pnand %p165_p1, %p162_p0 }
   0xa   :  { %170 = shalt.err (!%p167_p2)
}
   0xb   :  { %s171_s26 = scalar_lea.vmem %s39_s16, 256  ;;  %p176_p4 = scmp.lt.s32.totalorder %s39_s16, %s39_s16 }
   0xc   :  { %p172_p3 = scmp.ne.s32.totalorder %s39_s16, %s171_s26  ;;  %p177_p5 = scmp.lt.s32.totalorder %s171_s26, %s171_s26 }
   0xe   :  { %p178_p6 = por %p177_p5, %p176_p4 }
  0x10   :  { %p179_p7 = pnand %p178_p6, %p172_p3 }
  0x12   :  { %182 = shalt.err (!%p179_p7)
}
  0x13   :  { %s269_s27 = smov 128   ;;  %s270_s28 = smov 8  }
  0x14   :  { %44 = dma.hbm_to_vmem [thread:$0]  %s380_s2, 256, %s39_s16, [#allocation8], %s269_s27, %s269_s27, %s270_s28  }
  0x15   :  { %s183_s7 = scalar_lea.hbm %s378_s0, 16 }
  0x16   :  { %p184_p8 = scmp.ne.s32.totalorder %s378_s0, %s183_s7  ;;  %p187_p9 = scmp.lt.u32.totalorder %s183_s7, %s378_s0 }
  0x18   :  { %p189_p10 = pnand %p187_p9, %p184_p8 }
  0x1a   :  { %192 = shalt.err (!%p189_p10)
}
  0x1b   :  { %s271_s12 = smov [#allocation2]   ;;  %s193_s16 = scalar_lea.hbm %s379_s1, 256 }
  0x1c   :  { %20 = dma.hbm_to_smem %s378_s0, 16, %s271_s12, [#allocation5]  }
  0x1d   :  { %p194_p11 = scmp.ne.s32.totalorder %s379_s1, %s193_s16  ;;  %p197_p12 = scmp.lt.u32.totalorder %s193_s16, %s379_s1 }
  0x1f   :  { %p199_p13 = pnand %p197_p12, %p194_p11 }
  0x21   :  { %202 = shalt.err (!%p199_p13)
}
  0x22   :  { %s203_s22 = scalar_lea.vmem %s27_s18, 256  ;;  %p208_p1 = scmp.lt.s32.totalorder %s27_s18, %s27_s18 }
  0x23   :  { %p204_p0 = scmp.ne.s32.totalorder %s27_s18, %s203_s22  ;;  %p209_p2 = scmp.lt.s32.totalorder %s203_s22, %s203_s22 }
  0x25   :  { %p210_p3 = por %p209_p2, %p208_p1 }
  0x27   :  { %p211_p4 = pnand %p210_p3, %p204_p0 }
  0x29   :  { %214 = shalt.err (!%p211_p4)
}
  0x2a   :  { %32 = dma.hbm_to_vmem [thread:$0]  %s379_s1, 256, %s27_s18, [#allocation3], %s269_s27, %s269_s27, %s270_s28  }
  0x2b   :  { %s272_s24 = smov [#allocation9]   ;;  %s215_s30 = scalar_lea.hbm %s381_s3, 256 }
  0x2c   :  { %s50_s25 = sshll.u32 %s272_s24, 4  ;;  %p216_p5 = scmp.ne.s32.totalorder %s381_s3, %s215_s30  ;;  %s51_s25 = int_to_ptr.vmem [resolvable:$true] %s50_s25 }
  0x2d   :  { %p219_p6 = scmp.lt.u32.totalorder %s215_s30, %s381_s3 }
  0x2f   :  { %p221_p7 = pnand %p219_p6, %p216_p5 }
  0x31   :  { %224 = shalt.err (!%p221_p7)
}
  0x32   :  { %s225_s9 = scalar_lea.vmem %s51_s25, 256  ;;  %p230_p9 = scmp.lt.s32.totalorder %s51_s25, %s51_s25 }
  0x33   :  { %p226_p8 = scmp.ne.s32.totalorder %s51_s25, %s225_s9  ;;  %p231_p10 = scmp.lt.s32.totalorder %s225_s9, %s225_s9 }
  0x35   :  { %p232_p11 = por %p231_p10, %p230_p9 }
  0x37   :  { %p233_p12 = pnand %p232_p11, %p226_p8 }
  0x39   :  { %236 = shalt.err (!%p233_p12)
}
  0x3a   :  { %56 = dma.hbm_to_vmem [thread:$0]  %s381_s3, 256, %s51_s25, [#allocation8], %s269_s27, %s269_s27, %s270_s28  }
  0x3b   :  { %259 = dma.done.wait [#allocation5], 16  }
  0x3c   :  { %260 = vsyncadd [#allocation5], 4294967280 }
  0x3d   :  { %261 = dma.done.wait [#allocation3], 256  }
  0x3e   :  { %262 = vsyncadd [#allocation3], 4294967040 }
  0x3f   :  { %263 = dma.done.wait [#allocation8], 512  }
  0x40   :  { %264 = vsyncadd [#allocation8], 4294966784 }
  0x41   :  { %69 = sfence }
  0x42   :  { %s143_s10 = sld [smem:[#allocation2 + $0x1]]  ;;  %s356_s11 = sld [smem:[#allocation2]]  ;;  %v84_v2 = vld [vmem:[#allocation9] sm:$0xff]  ;;  %v82_v4 = vld [vmem:[#allocation7] sm:$0xff]  ;;  %v85_v6 = vld [vmem:[#allocation9 + $0x8] sm:$0xff] }
  0x43   :  { %v80_v3 = vld [vmem:[#allocation6] sm:$0xff]  ;;  %v81_v7 = vld [vmem:[#allocation6 + $0x8] sm:$0xff]  ;;  %v83_v8 = vld [vmem:[#allocation7 + $0x8] sm:$0xff]  ;;  %s273_s16 = smov [#allocation10]  }
  0x44   :  { %v112_v11 = vsub.f32 %v80_v3, %v82_v4  ;;  %v113_v13 = vsub.f32 %v81_v7, %v83_v8  ;;  %s129_s17 = sshll.u32 %s273_s16, 4  ;;  %s130_s17 = int_to_ptr.vmem [resolvable:$true] %s129_s17 }
  0x45   :  { %s237_s19 = scalar_lea.vmem %s130_s17, 256  ;;  %p242_p0 = scmp.lt.s32.totalorder %s130_s17, %s130_s17 }
  0x46   :  { %p238_p13 = scmp.ne.s32.totalorder %s130_s17, %s237_s19  ;;  %p243_p1 = scmp.lt.s32.totalorder %s237_s19, %s237_s19 }
  0x48   :  { %v75_v0 = vstv %s143_s10  ;;  %s72_s12 = smul.f32 %s356_s11, %s356_s11  ;;  %v104_v9 = vstv %s356_s11  ;;  %p244_p2 = por %p243_p1, %p242_p0 }
  0x49   :  { %153 = vrcp.f32 %v75_v0  ;;  %s73_s13 = smul.f32 %s143_s10, %s143_s10  ;;  %v100_v16 = vsub.f32 %v75_v0, %v82_v4  ;;  %v101_v17 = vsub.f32 %v75_v0, %v83_v8  ;;  %v93_v21 = vmul.f32 %v84_v2, %v75_v0 }
  0x4a   :  { %155 = vrcp.f32 %v104_v9  ;;  %s79_s14 = smul.f32 3.0, %s356_s11  ;;  %v94_v22 = vmul.f32 %v85_v6, %v75_v0  ;;  %p245_p3 = pnand %p244_p2, %p238_p13 }
  0x4b   :  { %s74_s3 = sadd.f32 %s73_s13, %s72_s12  ;;  %v102_v18 = vmul.f32 %v100_v16, %v100_v16  ;;  %v103_v19 = vmul.f32 %v101_v17, %v101_v17 }
  0x4c   :  { %v95_v25 = vstv %s79_s14 }
  0x4d   :  { %v86_v5 = vstv %s74_s3  ;;  %v96_v27 = vadd.f32 %v95_v25, %v93_v21  ;;  %v97_v28 = vadd.f32 %v95_v25, %v94_v22 }
  0x4e   :  { %v87_v10 = vmul.f32 %v86_v5, %v84_v2  ;;  %v88_v12 = vmul.f32 %v86_v5, %v85_v6 }
  0x50   :  { %v114_v14 = vsub.f32 %v112_v11, %v87_v10  ;;  %v115_v15 = vsub.f32 %v113_v13, %v88_v12 }
  0x52   :  { %157 = vrcp.f32 %v114_v14 }
  0x53   :  { %v154_v1 = vpop.eup %153  ;;  %159 = vrcp.f32 %v115_v15 }
  0x54   :  { %144 = vpush %v154_v1  ;;  %v156_v20 = vpop.eup %155 }
  0x55   :  { %v106_v23 = vmul.f32 %v156_v20, %v102_v18  ;;  %v107_v24 = vmul.f32 %v156_v20, %v103_v19 }
  0x57   :  { %v108_v29 = vsub.f32 %v84_v2, %v106_v23  ;;  %v109_v30 = vsub.f32 %v85_v6, %v107_v24 }
  0x5c   :  { %v158_v26 = vpop.eup %157 }
  0x5d   :  { %v160_v31 = vpop.eup %159  ;;  %v117_v37 = vmul.f32 %v158_v26, %v108_v29 }
  0x5e   :  { %v119_v38 = vmul.f32 %v160_v31, %v109_v30 }
  0x85   :  { %s145_s2 = spop %144 }
  0x86   :  { %s78_s15 = smul.f32 %s145_s2, %s356_s11 }
  0x88   :  { %v89_v32 = vstv %s78_s15 }
  0x89   :  { %v90_v33 = vadd.f32 %v89_v32, %v84_v2  ;;  %v91_v34 = vadd.f32 %v89_v32, %v85_v6 }
  0x8b   :  { %v98_v35 = vmul.f32 %v96_v27, %v90_v33  ;;  %v99_v36 = vmul.f32 %v97_v28, %v91_v34 }
  0x8d   :  { %v110_v39 = vadd.f32 %v98_v35, %v87_v10  ;;  %v111_v40 = vadd.f32 %v99_v36, %v88_v12 }
  0x8f   :  { %v120_v41 = vadd.f32 %v117_v37, %v110_v39  ;;  %v121_v42 = vadd.f32 %v119_v38, %v111_v40 }
  0x91   :  { %122 = vst [vmem:[#allocation10] sm:$0xff] %v120_v41  ;;  %123 = vst [vmem:[#allocation10 + $0x8] sm:$0xff] %v121_v42 }
  0x92   :  { %248 = shalt.err (!%p245_p3)
}
  0x93   :  { %s249_s22 = scalar_lea.hbm %s382_s4, 256 }
  0x94   :  { %p250_p4 = scmp.ne.s32.totalorder %s382_s4, %s249_s22  ;;  %p253_p5 = scmp.lt.u32.totalorder %s249_s22, %s382_s4 }
  0x96   :  { %p255_p6 = pnand %p253_p5, %p250_p4 }
  0x98   :  { %258 = shalt.err (!%p255_p6)
}
  0x99   :  { %135 = dma.vmem_to_hbm [thread:$0]  %s130_s17, 256, %s382_s4, [#allocation4], %s269_s27, %s269_s27, %s270_s28  }
  0x9a   :  { %265 = dma.done.wait [#allocation4], 256  }
  0x9b   :  { %266 = vsyncadd [#allocation4], 4294967040 }
  0x9c   :  { %139 = vsyncpa [#allocation3], 1 }
  0x9d   :  { %140 = vsyncpa [#allocation8], 1 }
  0x9e   :  { %141 = vsyncpa [#allocation4], 1 }
  0x9f   :  { %142 = vsyncpa [#allocation5], 1 }

</bundles_post_ra>
